<compile_context>
chip_gen: v7x
topology: tpu7x:2x2x1
jax: 0.10.0
libtpu: 0.0.40
codegen_flags: <defaults>
</compile_context>

<pallas_src>
import math

import jax
import jax.numpy as jnp
from jax.experimental import pallas as pl
from jax.experimental.pallas import tpu as pltpu


# ---------------------------------------------------------------------------
# Fused kernel: GLU (dual matmul via concatenated weights) + Linear + ReLU
# ---------------------------------------------------------------------------
def _glu_layers_kernel(x_ref, w_glu_ref, b_glu_ref, w_out_ref, b_out_ref,
                       o_ref, h_ref):
    """Grid is (batch_tiles, out_col_tiles); axis 1 is 'arbitrary'.

    At j == 0 the GLU hidden state h for the current batch tile is computed
    once and staged in the VMEM scratch `h_ref`; every j then consumes it
    against a (width, TN) column tile of w_out.
    """
    width = h_ref.shape[-1]

    @pl.when(pl.program_id(1) == 0)
    def _compute_glu_hidden():
        # x and w_glu share the matmul dtype (bf16 by default) -> no cast here.
        z = jnp.dot(x_ref[...], w_glu_ref[...],
                    preferred_element_type=jnp.float32) + b_glu_ref[...]
        lin = z[:, :width]          # lane-aligned: width % 128 == 0
        gate = z[:, width:]
        h_ref[...] = (lin * jax.nn.sigmoid(gate)).astype(h_ref.dtype)

    y = jnp.dot(h_ref[...], w_out_ref[...],
                preferred_element_type=jnp.float32) + b_out_ref[...]
    o_ref[...] = jnp.maximum(y, 0.0).astype(o_ref.dtype)


def _round_up(n, m):
    return ((n + m - 1) // m) * m


def _pick_vmem_limit(needed_bytes):
    """Clamp the requested scoped-VMEM limit to the chip's capacity."""
    try:
        cap = pltpu.get_tpu_info().vmem_capacity_bytes
    except Exception:  # pragma: no cover - conservative fallback (v7x-sized)
        cap = 64 * 1024 * 1024
    return max(32 * 1024 * 1024, min(int(needed_bytes), int(cap * 0.85)))


def glu_layers_forward(x, params, *, tm=512, tn=512, out_dtype=None):
    """Fused GLULayers forward.  x: (B, n_features)."""
    w_glu, b_glu = params["w_glu"], params["b_glu"]
    w_out, b_out = params["w_out"], params["b_out"]

    B, Din = x.shape
    width = w_out.shape[1]
    if width % 128 != 0:
        raise ValueError(
            f"width={width} must be a multiple of 128 for lane-dense "
            "slicing/stores (see TODO(synk) about padding in pack_params).")

    compute_dtype = w_glu.dtype
    # Activation I/O in the matmul dtype (ideally the caller already passes
    # bf16 so this cast is a no-op and HBM traffic is halved end-to-end).
    if x.dtype != compute_dtype:
        x = x.astype(compute_dtype)
    if out_dtype is None:
        out_dtype = compute_dtype

    # Batch tile: multiple of 8 sublanes; ragged last tile handled by Pallas
    # (no jnp.pad copy). Output-column tile: multiple of 128 lanes.
    tm_eff = min(tm, _round_up(B, 8))
    tn_eff = min(tn, width)
    grid = (pl.cdiv(B, tm_eff), pl.cdiv(width, tn_eff))

    io_bytes = jnp.dtype(compute_dtype).itemsize
    out_bytes = jnp.dtype(out_dtype).itemsize

    # Advisory cost estimate for the XLA scheduler.
    flops = 2 * B * Din * (2 * width) + 2 * B * width * width
    bytes_accessed = (B * Din * io_bytes + B * width * out_bytes
                      + w_glu.size * io_bytes + w_out.size * io_bytes
                      + b_glu.size * 4 + b_out.size * 4)
    cost = pl.CostEstimate(flops=int(flops), transcendentals=int(B * width),
                           bytes_accessed=int(bytes_accessed))

    def _footprint(resident_bufs):
        return (2 * tm_eff * Din * io_bytes                 # x tiles (dbl buf)
                + 2 * tm_eff * tn_eff * out_bytes           # out tiles
                + resident_bufs * Din * 2 * width * io_bytes  # w_glu
                + resident_bufs * 2 * width * 4             # b_glu (f32)
                + 2 * width * tn_eff * io_bytes             # w_out tiles
                + 2 * tn_eff * 4                            # b_out tiles
                + tm_eff * width * io_bytes                 # h scratch
                + tm_eff * 2 * width * 4)                   # f32 z intermediate

    def _run(resident_mode, resident_bufs):
        def resident_spec(shape, index_map):
            if resident_mode is None:
                return pl.BlockSpec(shape, index_map)
            return pl.BlockSpec(shape, index_map, pipeline_mode=resident_mode)

        vmem_limit = _pick_vmem_limit(_footprint(resident_bufs) * 1.3
                                      + (4 << 20))
        return pl.pallas_call(
            _glu_layers_kernel,
            out_shape=jax.ShapeDtypeStruct((B, width), out_dtype),
            grid=grid,
            in_specs=[
                # activation tile: pipelined along the batch grid axis,
                # constant over j (Pallas skips the redundant re-fetch).
                pl.BlockSpec((tm_eff, Din), lambda i, j: (i, 0)),
                # fused GLU weights/bias: constant index -> VMEM-resident.
                resident_spec((Din, 2 * width), lambda i, j: (0, 0)),
                resident_spec((1, 2 * width), lambda i, j: (0, 0)),
                # output linear: streamed column tiles.
                pl.BlockSpec((width, tn_eff), lambda i, j: (0, j)),
                pl.BlockSpec((1, tn_eff), lambda i, j: (0, j)),
            ],
            out_specs=pl.BlockSpec((tm_eff, tn_eff), lambda i, j: (i, j)),
            scratch_shapes=[pltpu.VMEM((tm_eff, width), compute_dtype)],
            compiler_params=pltpu.CompilerParams(
                # batch tiles shard across v7x's 2 TCs; near-no-op on v5e/v6e.
                dimension_semantics=("parallel", "arbitrary"),
                vmem_limit_bytes=vmem_limit,
            ),
            cost_estimate=cost,
        )(x, w_glu, b_glu, w_out, b_out)

    try:
        # Single-buffer the resident GLU weights/bias (constant index maps).
        return _run(pl.Buffered(1), 1)
    except Exception:
        # TODO(synk): some jax versions reject pipeline_mode on the main
        # pallas_call pipeline; fall back to default double-buffering.
        return _run(None, 2)


# ---------------------------------------------------------------------------
# Parameter init (mirrors torch xavier_uniform_ with gain + default bias init)
# ---------------------------------------------------------------------------
def _xavier_uniform(key, fan_in, fan_out, gain):
    bound = gain * math.sqrt(6.0 / (fan_in + fan_out))
    return jax.random.uniform(key, (fan_in, fan_out), jnp.float32, -bound, bound)


def _bias_init(key, fan_in, fan_out):
    bound = 1.0 / math.sqrt(fan_in)
    return jax.random.uniform(key, (1, fan_out), jnp.float32, -bound, bound)


def make_glu_layers_params(key, n_features, width):
    """f32 'master' params for GLULayers(depth=2, output=0)."""
    kl, kbl, kg, kbg, ko, kbo = jax.random.split(key, 6)
    gain_relu = math.sqrt(2.0)   # torch.nn.init.calculate_gain('relu')
    gain_sig = 1.0               # torch.nn.init.calculate_gain('sigmoid')
    w_lin = _xavier_uniform(kl, n_features, width, gain_relu)
    b_lin = _bias_init(kbl, n_features, width)
    w_gate = _xavier_uniform(kg, n_features, width, gain_sig)
    b_gate = _bias_init(kbg, n_features, width)
    w_out = _xavier_uniform(ko, width, width, gain_relu)
    b_out = _bias_init(kbo, width, width)
    return {
        "w_glu": jnp.concatenate([w_lin, w_gate], axis=1),   # (Din, 2*width)
        "b_glu": jnp.concatenate([b_lin, b_gate], axis=1),   # (1, 2*width)
        "w_out": w_out,                                      # (width, width)
        "b_out": b_out,                                      # (1, width)
    }


def pack_params(params_f32, *, matmul_dtype=jnp.bfloat16):
    """Cast matmul weights to the MXU dtype; keep biases in f32."""
    return {
        "w_glu": params_f32["w_glu"].astype(matmul_dtype),
        "b_glu": params_f32["b_glu"],
        "w_out": params_f32["w_out"].astype(matmul_dtype),
        "b_out": params_f32["b_out"],
    }


# ---------------------------------------------------------------------------
# Pure-JAX reference (full f32)
# ---------------------------------------------------------------------------
def reference_forward(x, p):
    width = p["w_out"].shape[0]
    z = x @ p["w_glu"] + p["b_glu"]
    h = z[:, :width] * jax.nn.sigmoid(z[:, width:])
    return jnp.maximum(h @ p["w_out"] + p["b_out"], 0.0)


if __name__ == "__main__":
    # Small shapes consistent with the module: batch=8, n_features=16, width=128.
    n_features, width = 16, 128
    batch = 8

    key = jax.random.PRNGKey(0)
    kx, kp = jax.random.split(key)

    x_f32 = jax.random.normal(kx, (batch, n_features), jnp.float32)
    params_f32 = make_glu_layers_params(kp, n_features, width)
    params = pack_params(params_f32, matmul_dtype=jnp.bfloat16)

    # bf16 activation I/O: cast once on the data path (half the HBM bytes of
    # f32 into/out of the bandwidth-bound kernel).
    x = x_f32.astype(jnp.bfloat16)

    out = glu_layers_forward(x, params)
    out = jax.block_until_ready(out)

    ref = reference_forward(x_f32, params_f32)
    assert out.shape == (batch, width)
    assert out.dtype == jnp.bfloat16
    out_f32 = out.astype(jnp.float32)
    # bf16 MXU operands + bf16 output storage, f32 accumulation -> loose tol.
    assert jnp.allclose(out_f32, ref, atol=2.5e-2, rtol=2.5e-2), float(
        jnp.max(jnp.abs(out_f32 - ref)))

    print("KERNEL_OK")
</pallas_src>

<mosaic_0001>
module attributes {stable_mosaic.version = 11 : i64} {
  func.func @_glu_layers_kernel(%arg0: i32, %arg1: i32, %arg2: memref<8x16xbf16, #tpu.memory_space<vmem>>, %arg3: memref<16x256xbf16, #tpu.memory_space<vmem>>, %arg4: memref<1x256xf32, #tpu.memory_space<vmem>>, %arg5: memref<128x128xbf16, #tpu.memory_space<vmem>>, %arg6: memref<1x128xf32, #tpu.memory_space<vmem>>, %arg7: memref<8x128xbf16, #tpu.memory_space<vmem>>, %arg8: memref<8x128xbf16, #tpu.memory_space<vmem>>) attributes {dimension_semantics = [#tpu.dimension_semantics<parallel>, #tpu.dimension_semantics<arbitrary>], iteration_bounds = array<i64: 1, 1>, scalar_prefetch = 0 : i64, scratch_operands = 1 : i64, tpu.core_type = #tpu.core_type<tc>, window_params = [{transform_indices = @transform_0, window_bounds = array<i64: 8, 16>}, {pipeline_mode = #tpu.pipeline_mode<synchronous>, transform_indices = @transform_1, window_bounds = array<i64: 16, 256>}, {pipeline_mode = #tpu.pipeline_mode<synchronous>, transform_indices = @transform_2, window_bounds = array<i64: 1, 256>}, {transform_indices = @transform_3, window_bounds = array<i64: 128, 128>}, {transform_indices = @transform_4, window_bounds = array<i64: 1, 128>}, {transform_indices = @transform_5, window_bounds = array<i64: 8, 128>}]} {
    %c0_i32 = arith.constant 0 : i32
    %0 = arith.cmpi eq, %arg1, %c0_i32 : i32
    %1 = arith.extui %0 : i1 to i32
    %c0_i32_0 = arith.constant 0 : i32
    %2 = arith.cmpi ne, %1, %c0_i32_0 : i32
    scf.if %2 {
      %c0_9 = arith.constant 0 : index
      %c0_10 = arith.constant 0 : index
      %13 = vector.load %arg2[%c0_9, %c0_10] : memref<8x16xbf16, #tpu.memory_space<vmem>>, vector<8x16xbf16>
      %c0_11 = arith.constant 0 : index
      %c0_12 = arith.constant 0 : index
      %14 = vector.load %arg3[%c0_11, %c0_12] : memref<16x256xbf16, #tpu.memory_space<vmem>>, vector<16x256xbf16>
      %cst_13 = arith.constant dense<0.000000e+00> : vector<8x256xf32>
      %15 = tpu.matmul %13, %14, %cst_13 {dimension_numbers = #tpu.dot_dimension_numbers<[1], [0], [0], [1], [0, 0, 1, 1], [], []>} : vector<8x16xbf16>, vector<16x256xbf16>, vector<8x256xf32> -> vector<8x256xf32>
      %c0_14 = arith.constant 0 : index
      %c0_15 = arith.constant 0 : index
      %16 = vector.load %arg4[%c0_14, %c0_15] : memref<1x256xf32, #tpu.memory_space<vmem>>, vector<1x256xf32>
      %17 = vector.broadcast %16 : vector<1x256xf32> to vector<8x256xf32>
      %18 = arith.addf %15, %17 : vector<8x256xf32>
      %19 = vector.extract_strided_slice %18 {offsets = [0, 0], sizes = [8, 128], strides = [1, 1]} : vector<8x256xf32> to vector<8x128xf32>
      %20 = vector.extract_strided_slice %18 {offsets = [0, 128], sizes = [8, 128], strides = [1, 1]} : vector<8x256xf32> to vector<8x128xf32>
      %21 = arith.negf %20 : vector<8x128xf32>
      %22 = math.exp %21 : vector<8x128xf32>
      %cst_16 = arith.constant 1.000000e+00 : f32
      %23 = vector.broadcast %cst_16 : f32 to vector<8x128xf32>
      %24 = arith.addf %23, %22 : vector<8x128xf32>
      %25 = arith.divf %23, %24 : vector<8x128xf32>
      %26 = arith.mulf %19, %25 : vector<8x128xf32>
      %27 = arith.truncf %26 : vector<8x128xf32> to vector<8x128xbf16>
      %c0_17 = arith.constant 0 : index
      %c0_18 = arith.constant 0 : index
      %28 = vector.load %arg8[%c0_17, %c0_18] : memref<8x128xbf16, #tpu.memory_space<vmem>>, vector<8x128xbf16>
      tpu.vector_store %arg8[%c0_17, %c0_18], %27 {strides = array<i32>} : memref<8x128xbf16, #tpu.memory_space<vmem>>, vector<8x128xbf16>,
    } else {
    }
    %c0 = arith.constant 0 : index
    %c0_1 = arith.constant 0 : index
    %3 = vector.load %arg8[%c0, %c0_1] : memref<8x128xbf16, #tpu.memory_space<vmem>>, vector<8x128xbf16>
    %c0_2 = arith.constant 0 : index
    %c0_3 = arith.constant 0 : index
    %4 = vector.load %arg5[%c0_2, %c0_3] : memref<128x128xbf16, #tpu.memory_space<vmem>>, vector<128x128xbf16>
    %cst = arith.constant dense<0.000000e+00> : vector<8x128xf32>
    %5 = tpu.matmul %3, %4, %cst {dimension_numbers = #tpu.dot_dimension_numbers<[1], [0], [0], [1], [0, 0, 1, 1], [], []>} : vector<8x128xbf16>, vector<128x128xbf16>, vector<8x128xf32> -> vector<8x128xf32>
    %c0_4 = arith.constant 0 : index
    %c0_5 = arith.constant 0 : index
    %6 = vector.load %arg6[%c0_4, %c0_5] : memref<1x128xf32, #tpu.memory_space<vmem>>, vector<1x128xf32>
    %7 = vector.broadcast %6 : vector<1x128xf32> to vector<8x128xf32>
    %8 = arith.addf %5, %7 : vector<8x128xf32>
    %cst_6 = arith.constant 0.000000e+00 : f32
    %9 = vector.broadcast %cst_6 : f32 to vector<8x128xf32>
    %10 = arith.maximumf %8, %9 : vector<8x128xf32>
    %11 = arith.truncf %10 : vector<8x128xf32> to vector<8x128xbf16>
    %c0_7 = arith.constant 0 : index
    %c0_8 = arith.constant 0 : index
    %12 = vector.load %arg7[%c0_7, %c0_8] : memref<8x128xbf16, #tpu.memory_space<vmem>>, vector<8x128xbf16>
    tpu.vector_store %arg7[%c0_7, %c0_8], %11 {strides = array<i32>} : memref<8x128xbf16, #tpu.memory_space<vmem>>, vector<8x128xbf16>,
    return
  }
  func.func @transform_0(%arg0: i32, %arg1: i32) -> (i32, i32) {
    %c0_i32 = arith.constant 0 : i32
    %c0_i32_0 = arith.constant 0 : i32
    return %arg0, %c0_i32 : i32, i32
  }
  func.func @transform_1(%arg0: i32, %arg1: i32) -> (i32, i32) {
    %c0_i32 = arith.constant 0 : i32
    %c0_i32_0 = arith.constant 0 : i32
    %c0_i32_1 = arith.constant 0 : i32
    return %c0_i32, %c0_i32_0 : i32, i32
  }
  func.func @transform_2(%arg0: i32, %arg1: i32) -> (i32, i32) {
    %c0_i32 = arith.constant 0 : i32
    %c0_i32_0 = arith.constant 0 : i32
    %c0_i32_1 = arith.constant 0 : i32
    return %c0_i32, %c0_i32_0 : i32, i32
  }
  func.func @transform_3(%arg0: i32, %arg1: i32) -> (i32, i32) {
    %c0_i32 = arith.constant 0 : i32
    %c0_i32_0 = arith.constant 0 : i32
    return %c0_i32, %arg1 : i32, i32
  }
  func.func @transform_4(%arg0: i32, %arg1: i32) -> (i32, i32) {
    %c0_i32 = arith.constant 0 : i32
    %c0_i32_0 = arith.constant 0 : i32
    return %c0_i32, %arg1 : i32, i32
  }
  func.func @transform_5(%arg0: i32, %arg1: i32) -> (i32, i32) {
    %c0_i32 = arith.constant 0 : i32
    return %arg0, %arg1 : i32, i32
  }
}

module attributes {stable_mosaic.version = 11 : i64} {
  func.func @_glu_layers_kernel(%arg0: i32, %arg1: i32, %arg2: memref<8x16xbf16, #tpu.memory_space<vmem>>, %arg3: memref<16x256xbf16, #tpu.memory_space<vmem>>, %arg4: memref<1x256xf32, #tpu.memory_space<vmem>>, %arg5: memref<128x128xbf16, #tpu.memory_space<vmem>>, %arg6: memref<1x128xf32, #tpu.memory_space<vmem>>, %arg7: memref<8x128xbf16, #tpu.memory_space<vmem>>, %arg8: memref<8x128xbf16, #tpu.memory_space<vmem>>) attributes {dimension_semantics = [#tpu.dimension_semantics<parallel>, #tpu.dimension_semantics<arbitrary>], iteration_bounds = array<i64: 1, 1>, scalar_prefetch = 0 : i64, scratch_operands = 1 : i64, tpu.core_type = #tpu.core_type<tc>, window_params = [{transform_indices = @transform_0, window_bounds = array<i64: 8, 16>}, {pipeline_mode = #tpu.pipeline_mode<synchronous>, transform_indices = @transform_1, window_bounds = array<i64: 16, 256>}, {pipeline_mode = #tpu.pipeline_mode<synchronous>, transform_indices = @transform_2, window_bounds = array<i64: 1, 256>}, {transform_indices = @transform_3, window_bounds = array<i64: 128, 128>}, {transform_indices = @transform_4, window_bounds = array<i64: 1, 128>}, {transform_indices = @transform_5, window_bounds = array<i64: 8, 128>}]} {
    %c0_i32 = arith.constant 0 : i32
    %0 = arith.cmpi eq, %arg1, %c0_i32 : i32
    %1 = arith.extui %0 : i1 to i32
    %c0_i32_0 = arith.constant 0 : i32
    %2 = arith.cmpi ne, %1, %c0_i32_0 : i32
    scf.if %2 {
      %c0_9 = arith.constant 0 : index
      %c0_10 = arith.constant 0 : index
      %13 = vector.load %arg2[%c0_9, %c0_10] : memref<8x16xbf16, #tpu.memory_space<vmem>>, vector<8x16xbf16>
      %c0_11 = arith.constant 0 : index
      %c0_12 = arith.constant 0 : index
      %14 = vector.load %arg3[%c0_11, %c0_12] : memref<16x256xbf16, #tpu.memory_space<vmem>>, vector<16x256xbf16>
      %cst_13 = arith.constant dense<0.000000e+00> : vector<8x256xf32>
      %15 = tpu.matmul %13, %14, %cst_13 {dimension_numbers = #tpu.dot_dimension_numbers<[1], [0], [0], [1], [0, 0, 1, 1], [], []>} : vector<8x16xbf16>, vector<16x256xbf16>, vector<8x256xf32> -> vector<8x256xf32>
      %c0_14 = arith.constant 0 : index
      %c0_15 = arith.constant 0 : index
      %16 = vector.load %arg4[%c0_14, %c0_15] : memref<1x256xf32, #tpu.memory_space<vmem>>, vector<1x256xf32>
      %17 = vector.broadcast %16 : vector<1x256xf32> to vector<8x256xf32>
      %18 = arith.addf %15, %17 : vector<8x256xf32>
      %19 = vector.extract_strided_slice %18 {offsets = [0, 0], sizes = [8, 128], strides = [1, 1]} : vector<8x256xf32> to vector<8x128xf32>
      %20 = vector.extract_strided_slice %18 {offsets = [0, 128], sizes = [8, 128], strides = [1, 1]} : vector<8x256xf32> to vector<8x128xf32>
      %21 = arith.negf %20 : vector<8x128xf32>
      %22 = math.exp %21 : vector<8x128xf32>
      %cst_16 = arith.constant 1.000000e+00 : f32
      %23 = vector.broadcast %cst_16 : f32 to vector<8x128xf32>
      %24 = arith.addf %23, %22 : vector<8x128xf32>
      %25 = arith.divf %23, %24 : vector<8x128xf32>
      %26 = arith.mulf %19, %25 : vector<8x128xf32>
      %27 = arith.truncf %26 : vector<8x128xf32> to vector<8x128xbf16>
      %c0_17 = arith.constant 0 : index
      %c0_18 = arith.constant 0 : index
      %28 = vector.load %arg8[%c0_17, %c0_18] : memref<8x128xbf16, #tpu.memory_space<vmem>>, vector<8x128xbf16>
      tpu.vector_store %arg8[%c0_17, %c0_18], %27 {strides = array<i32>} : memref<8x128xbf16, #tpu.memory_space<vmem>>, vector<8x128xbf16>,
    } else {
    }
    %c0 = arith.constant 0 : index
    %c0_1 = arith.constant 0 : index
    %3 = vector.load %arg8[%c0, %c0_1] : memref<8x128xbf16, #tpu.memory_space<vmem>>, vector<8x128xbf16>
    %c0_2 = arith.constant 0 : index
    %c0_3 = arith.constant 0 : index
    %4 = vector.load %arg5[%c0_2, %c0_3] : memref<128x128xbf16, #tpu.memory_space<vmem>>, vector<128x128xbf16>
    %cst = arith.constant dense<0.000000e+00> : vector<8x128xf32>
    %5 = tpu.matmul %3, %4, %cst {dimension_numbers = #tpu.dot_dimension_numbers<[1], [0], [0], [1], [0, 0, 1, 1], [], []>} : vector<8x128xbf16>, vector<128x128xbf16>, vector<8x128xf32> -> vector<8x128xf32>
    %c0_4 = arith.constant 0 : index
    %c0_5 = arith.constant 0 : index
    %6 = vector.load %arg6[%c0_4, %c0_5] : memref<1x128xf32, #tpu.memory_space<vmem>>, vector<1x128xf32>
    %7 = vector.broadcast %6 : vector<1x128xf32> to vector<8x128xf32>
    %8 = arith.addf %5, %7 : vector<8x128xf32>
    %cst_6 = arith.constant 0.000000e+00 : f32
    %9 = vector.broadcast %cst_6 : f32 to vector<8x128xf32>
    %10 = arith.maximumf %8, %9 : vector<8x128xf32>
    %11 = arith.truncf %10 : vector<8x128xf32> to vector<8x128xbf16>
    %c0_7 = arith.constant 0 : index
    %c0_8 = arith.constant 0 : index
    %12 = vector.load %arg7[%c0_7, %c0_8] : memref<8x128xbf16, #tpu.memory_space<vmem>>, vector<8x128xbf16>
    tpu.vector_store %arg7[%c0_7, %c0_8], %11 {strides = array<i32>} : memref<8x128xbf16, #tpu.memory_space<vmem>>, vector<8x128xbf16>,
    return
  }
  func.func @transform_0(%arg0: i32, %arg1: i32) -> (i32, i32) {
    %c0_i32 = arith.constant 0 : i32
    %c0_i32_0 = arith.constant 0 : i32
    return %arg0, %c0_i32 : i32, i32
  }
  func.func @transform_1(%arg0: i32, %arg1: i32) -> (i32, i32) {
    %c0_i32 = arith.constant 0 : i32
    %c0_i32_0 = arith.constant 0 : i32
    %c0_i32_1 = arith.constant 0 : i32
    return %c0_i32, %c0_i32_0 : i32, i32
  }
  func.func @transform_2(%arg0: i32, %arg1: i32) -> (i32, i32) {
    %c0_i32 = arith.constant 0 : i32
    %c0_i32_0 = arith.constant 0 : i32
    %c0_i32_1 = arith.constant 0 : i32
    return %c0_i32, %c0_i32_0 : i32, i32
  }
  func.func @transform_3(%arg0: i32, %arg1: i32) -> (i32, i32) {
    %c0_i32 = arith.constant 0 : i32
    %c0_i32_0 = arith.constant 0 : i32
    return %c0_i32, %arg1 : i32, i32
  }
  func.func @transform_4(%arg0: i32, %arg1: i32) -> (i32, i32) {
    %c0_i32 = arith.constant 0 : i32
    %c0_i32_0 = arith.constant 0 : i32
    return %c0_i32, %arg1 : i32, i32
  }
  func.func @transform_5(%arg0: i32, %arg1: i32) -> (i32, i32) {
    %c0_i32 = arith.constant 0 : i32
    return %arg0, %arg1 : i32, i32
  }
}

</mosaic_0001>

<bundles_post_ra>
// kernel: tpu_custom_call.1
= control target key start
LH: loop header
LB: loop body
LE: loop exit
PB: predicated region body
PF: predicated region fallthrough
CT: control target
= control target key end

     0   :  { %10 = vsyncpa [#allocation4], 0  ;;  %s532_s0 = inlined_call_operand.hbm [shape: bf16[8,16], index: 0, kind: input, shape index: {}]   ;;  %s533_s1 = inlined_call_operand.hbm [shape: bf16[16,256], index: 1, kind: input, shape index: {}]   ;;  %s534_s2 = inlined_call_operand.vmem [shape: f32[1,256], index: 2, kind: input, shape index: {}]   ;;  %s535_s3 = inlined_call_operand.hbm [shape: bf16[128,128], index: 3, kind: input, shape index: {}]   ;;  %s536_s4 = inlined_call_operand.vmem [shape: f32[1,128], index: 4, kind: input, shape index: {}]   ;;  %s537_s5 = inlined_call_operand.hbm [shape: bf16[8,128], index: 5, kind: output, shape index: {}]  }
   0x1   :  { %11 = vsyncpa [#allocation7], 0 }
   0x2   :  { %12 = vsyncpa [#allocation5], 0  ;;  %s437_s18 = smov [#allocation6]   ;;  %s343_s22 = scalar_lea.hbm %s533_s1, 256 }
   0x3   :  { %s28_s19 = sshll.u32 %s437_s18, 4  ;;  %p344_p0 = scmp.ne.s32.totalorder %s533_s1, %s343_s22  ;;  %s29_s19 = int_to_ptr.vmem [resolvable:$true] %s28_s19 }
   0x4   :  { %p347_p1 = scmp.lt.u32.totalorder %s343_s22, %s533_s1 }
   0x6   :  { %p349_p2 = pnand %p347_p1, %p344_p0 }
   0x8   :  { %352 = shalt.err (!%p349_p2)
}
   0x9   :  { %s353_s27 = scalar_lea.vmem %s29_s19, 256  ;;  %p358_p4 = scmp.lt.s32.totalorder %s29_s19, %s29_s19 }
   0xa   :  { %p354_p3 = scmp.ne.s32.totalorder %s29_s19, %s353_s27  ;;  %p359_p5 = scmp.lt.s32.totalorder %s353_s27, %s353_s27 }
   0xc   :  { %p360_p6 = por %p359_p5, %p358_p4 }
   0xe   :  { %p361_p7 = pnand %p360_p6, %p354_p3 }
  0x10   :  { %364 = shalt.err (!%p361_p7)
}
  0x11   :  { %s438_s28 = smov 128   ;;  %s439_s29 = smov 8  }
  0x12   :  { %34 = dma.hbm_to_vmem [thread:$0]  %s533_s1, 256, %s29_s19, [#allocation7], %s438_s28, %s438_s28, %s439_s29  }
  0x13   :  { %s440_s7 = smov [#allocation3]   ;;  %s441_s9 = smov [#allocation8]  }
  0x14   :  { %s19_s8 = sshll.u32 %s440_s7, 4  ;;  %s42_s10 = sshll.u32 %s441_s9, 4  ;;  %s20_s8 = int_to_ptr.vmem [resolvable:$true] %s19_s8  ;;  %s43_s10 = int_to_ptr.vmem [resolvable:$true] %s42_s10 }
  0x15   :  { %s365_s13 = scalar_lea.hbm %s532_s0, 64 }
  0x16   :  { %p366_p8 = scmp.ne.s32.totalorder %s532_s0, %s365_s13  ;;  %p369_p9 = scmp.lt.u32.totalorder %s365_s13, %s532_s0 }
  0x18   :  { %p371_p10 = pnand %p369_p9, %p366_p8 }
  0x1a   :  { %374 = shalt.err (!%p371_p10)
}
  0x1b   :  { %s375_s1 = scalar_lea.vmem %s20_s8, 64  ;;  %p380_p12 = scmp.lt.s32.totalorder %s20_s8, %s20_s8 }
  0x1c   :  { %p376_p11 = scmp.ne.s32.totalorder %s20_s8, %s375_s1  ;;  %p381_p13 = scmp.lt.s32.totalorder %s375_s1, %s375_s1 }
  0x1e   :  { %p382_p0 = por %p381_p13, %p380_p12 }
  0x20   :  { %p383_p1 = pnand %p382_p0, %p376_p11 }
  0x22   :  { %386 = shalt.err (!%p383_p1)
}
  0x23   :  { %22 = dma.hbm_to_vmem [thread:$0]  %s532_s0, 64, %s20_s8, [#allocation4]  }
  0x24   :  { %s387_s22 = scalar_lea.hbm %s535_s3, 1024 }
  0x25   :  { %p388_p2 = scmp.ne.s32.totalorder %s535_s3, %s387_s22  ;;  %p391_p3 = scmp.lt.u32.totalorder %s387_s22, %s535_s3 }
  0x27   :  { %p393_p4 = pnand %p391_p3, %p388_p2 }
  0x29   :  { %396 = shalt.err (!%p393_p4)
}
  0x2a   :  { %s397_s27 = scalar_lea.vmem %s43_s10, 1024  ;;  %p402_p6 = scmp.lt.s32.totalorder %s43_s10, %s43_s10 }
  0x2b   :  { %p398_p5 = scmp.ne.s32.totalorder %s43_s10, %s397_s27  ;;  %p403_p7 = scmp.lt.s32.totalorder %s397_s27, %s397_s27 }
  0x2d   :  { %p404_p8 = por %p403_p7, %p402_p6 }
  0x2f   :  { %p405_p9 = pnand %p404_p8, %p398_p5 }
  0x31   :  { %408 = shalt.err (!%p405_p9)
}
  0x32   :  { %s442_s0 = smov 64   ;;  %s443_s28 = smov 4  }
  0x33   :  { %48 = dma.hbm_to_vmem [thread:$0]  %s535_s3, 1024, %s43_s10, [#allocation7], %s442_s0, %s442_s0, %s443_s28  }
  0x34   :  { %431 = dma.done.wait [#allocation4], 64  }
  0x35   :  { %432 = vsyncadd [#allocation4], 4294967232 }
  0x36   :  { %433 = dma.done.wait [#allocation7], 1280  }
  0x37   :  { %434 = vsyncadd [#allocation7], 4294966016  ;;  %v444_v0 = vmov 0   ;;  %v328_v1 = vld [vmem:[#allocation6 + $0x4] ss:$8 sps:$4 sm:$0xff]   ;;  %vm90_vm0 = vcmask 130048   ;;  %v70_v13 = vlaneseq }
  0x38   :  { %126 = vmatprep.mubr.bf16.mxu0 %v444_v0  ;;  %v330_v2 = vld [vmem:[#allocation6] ss:$8 sps:$4 sm:$0xff]   ;;  %v65_v3 = vld [vmem:[#allocation3] sm:$0xf]  ;;  %94 = vmatprep.subr.bf16.mxu0 %v328_v1  ;;  %v331_v4 = vld [vmem:[#allocation8] sm:$0xff]   ;;  %v445_v5 = vmov 0.0  }
  0x39   :  { %95 = vmatpush1.bf16.msra.mxu0 %v330_v2  ;;  %297 = vmatprep.subr.bf16.mxu1 %v445_v5  ;;  %v332_v6 = vld [vmem:[#allocation8 + $0x8] sm:$0xff]   ;;  %v333_v7 = vld [vmem:[#allocation8 + $0x10] sm:$0xff]   ;;  %v334_v8 = vld [vmem:[#allocation8 + $0x18] sm:$0xff]   ;;  %vm446_vm1 = vmmov 0   ;;  %v71_v14 = vshrl.u32 %v70_v13, 7  ;;  %s447_s8 = smov [#allocation9]  }
  0x3a   :  { %298 = vmatpush3.bf16.msra.mxu1 %v331_v4  ;;  %v335_v9 = vld [vmem:[#allocation8 + $0x20] sm:$0xff]   ;;  %v336_v10 = vld [vmem:[#allocation8 + $0x28] sm:$0xff]   ;;  %v337_v11 = vld [vmem:[#allocation8 + $0x30] sm:$0xff]   ;;  %313 = vmatprep.mubr.msk.bf16.mxu1 %vm446_vm1, %v445_v5  ;;  %s265_s9 = sshll.u32 %s447_s8, 4  ;;  %s266_s9 = int_to_ptr.vmem [resolvable:$true] %s265_s9 }
  0x3b   :  { %299 = vmatprep.subr.bf16.mxu1 %v445_v5  ;;  %v338_v12 = vld [vmem:[#allocation8 + $0x38] sm:$0xff]   ;;  %v76_v15 = vsub.s32 1, %v71_v14  ;;  %v68_v16 = vld [vmem:[%s534_s2] sm:$0x3]  ;;  %v72_v26 = vsub.s32 0, %v71_v14  ;;  %s409_s10 = scalar_lea.vmem %s266_s9, 64  ;;  %p414_p11 = scmp.lt.s32.totalorder %s266_s9, %s266_s9 }
  0x3c   :  { %277 = vmatmul.mubr.msk.bf16.vlgmr.msra.gmra.mrb[0].mxu0 %vm90_vm0, %v65_v3  ;;  %v279_v33 = vld [vmem:[%s536_s4] ss:$0 sm:$0xff]  ;;  %p410_p10 = scmp.ne.s32.totalorder %s266_s9, %s409_s10  ;;  %p415_p12 = scmp.lt.s32.totalorder %s409_s10, %s409_s10 }
  0x3d   :  { %v77_v17 = vrot.slane %v68_v16, %v76_v15  ;;  %v73_v27 = vrot.slane %v68_v16, %v72_v26 }
  0x3e   :  { %300 = vmatpush3.bf16.msra.mxu1 %v332_v6  ;;  %p416_p13 = por %p415_p12, %p414_p11 }
  0x3f   :  { %301 = vmatprep.subr.bf16.mxu1 %v445_v5 }
  0x40   :  { %p417_p0 = pnand %p416_p13, %p410_p10 }
  0x42   :  { %302 = vmatpush3.bf16.msra.mxu1 %v333_v7 }
  0x43   :  { %303 = vmatprep.subr.bf16.mxu1 %v445_v5 }
  0x46   :  { %304 = vmatpush3.bf16.msra.mxu1 %v334_v8 }
  0x47   :  { %305 = vmatprep.subr.bf16.mxu1 %v445_v5 }
  0x4a   :  { %306 = vmatpush3.bf16.msra.mxu1 %v335_v9 }
  0x4b   :  { %307 = vmatprep.subr.bf16.mxu1 %v445_v5 }
  0x4e   :  { %308 = vmatpush3.bf16.msra.mxu1 %v336_v10 }
  0x4f   :  { %309 = vmatprep.subr.bf16.mxu1 %v445_v5 }
  0x52   :  { %310 = vmatpush3.bf16.msra.mxu1 %v337_v11 }
  0x53   :  { %311 = vmatprep.subr.bf16.mxu1 %v445_v5 }
  0x56   :  { %312 = vmatpush3.bf16.msra.mxu1 %v338_v12 }
 0x10f   :  { %v128_v18 = vpop.f32.mrb[0].mxu0 }
 0x110   :  { %v130_v19 = vpop.f32.mrb[1].mxu0  ;;  %v129_v28 = vadd.f32 %v128_v18, %v73_v27 }
 0x111   :  { %v131_v20 = vadd.f32 %v130_v19, %v77_v17  ;;  %v132_v21 = vpop.f32.mrb[2].mxu0 }
 0x112   :  { %v133_v22 = vpop.f32.mrb[3].mxu0 }
 0x113   :  { %v278_v23 = vmul.f32 -1.442695, %v131_v20 }
 0x115   :  { %339 = vpow2.f32 %v278_v23 }
 0x11f   :  { %v340_v24 = vpop.eup %339 }
 0x120   :  { %v138_v25 = vadd.f32 1.0, %v340_v24 }
 0x122   :  { %341 = vrcp.f32 %v138_v25 }
 0x12c   :  { %v342_v29 = vpop.eup %341 }
 0x12d   :  { %v141_v30 = vmul.f32 %v342_v29, %v129_v28 }
 0x12f   :  { %v142_v31 = vpack.c.bf16 %v141_v30, %v141_v30 }
 0x131   :  { %143 = vst [vmem:[#allocation2] sm:$0xf] %v142_v31 }
 0x138   :  { %v144_v32 = vld [vmem:[#allocation2] sm:$0xf] }
 0x139   :  { %314 = vmatmul.mubr.bf16.vlgmr.msra.gmra.mrb[0].mxu1 %v144_v32 }
 0x20c   :  { %v250_v34 = vpop.f32.mrb[0].mxu1 }
 0x20d   :  { %v251_v35 = vadd.f32 %v279_v33, %v250_v34  ;;  %v315_v36 = vpop.f32.mrb[1].mxu1 }
 0x20e   :  { %v253_v37 = vpop.f32.mrb[2].mxu1 }
 0x20f   :  { %v256_v38 = vmax.f32 %v251_v35, 0.0  ;;  %v316_v39 = vpop.f32.mrb[3].mxu1 }
 0x211   :  { %v257_v40 = vpack.c.bf16 %v256_v38, %v256_v38 }
 0x213   :  { %258 = vst [vmem:[#allocation9] sm:$0xf] %v257_v40 }
 0x214   :  { %420 = shalt.err (!%p417_p0)
}
 0x215   :  { %s421_s12 = scalar_lea.hbm %s537_s5, 64 }
 0x216   :  { %p422_p1 = scmp.ne.s32.totalorder %s537_s5, %s421_s12  ;;  %p425_p2 = scmp.lt.u32.totalorder %s421_s12, %s537_s5 }
 0x218   :  { %p427_p3 = pnand %p425_p2, %p422_p1 }
 0x21a   :  { %430 = shalt.err (!%p427_p3)
}
 0x21b   :  { %268 = dma.vmem_to_hbm [thread:$0]  %s266_s9, 64, %s537_s5, [#allocation5]  }
 0x21c   :  { %435 = dma.done.wait [#allocation5], 64  }
 0x21d   :  { %436 = vsyncadd [#allocation5], 4294967232 }
 0x21e   :  { %272 = vsyncpa [#allocation4], 1 }
 0x21f   :  { %273 = vsyncpa [#allocation7], 1 }
 0x220   :  { %274 = vsyncpa [#allocation5], 1 }

// kernel: tpu_custom_call.1
= control target key start
LH: loop header
LB: loop body
LE: loop exit
PB: predicated region body
PF: predicated region fallthrough
CT: control target
= control target key end

     0   :  { %10 = vsyncpa [#allocation4], 0  ;;  %s532_s0 = inlined_call_operand.hbm [shape: bf16[8,16], index: 0, kind: input, shape index: {}]   ;;  %s533_s1 = inlined_call_operand.hbm [shape: bf16[16,256], index: 1, kind: input, shape index: {}]   ;;  %s534_s2 = inlined_call_operand.vmem [shape: f32[1,256], index: 2, kind: input, shape index: {}]   ;;  %s535_s3 = inlined_call_operand.hbm [shape: bf16[128,128], index: 3, kind: input, shape index: {}]   ;;  %s536_s4 = inlined_call_operand.vmem [shape: f32[1,128], index: 4, kind: input, shape index: {}]   ;;  %s537_s5 = inlined_call_operand.hbm [shape: bf16[8,128], index: 5, kind: output, shape index: {}]  }
   0x1   :  { %11 = vsyncpa [#allocation7], 0 }
   0x2   :  { %12 = vsyncpa [#allocation5], 0  ;;  %s437_s18 = smov [#allocation6]   ;;  %s343_s22 = scalar_lea.hbm %s533_s1, 256 }
   0x3   :  { %s28_s19 = sshll.u32 %s437_s18, 4  ;;  %p344_p0 = scmp.ne.s32.totalorder %s533_s1, %s343_s22  ;;  %s29_s19 = int_to_ptr.vmem [resolvable:$true] %s28_s19 }
   0x4   :  { %p347_p1 = scmp.lt.u32.totalorder %s343_s22, %s533_s1 }
   0x6   :  { %p349_p2 = pnand %p347_p1, %p344_p0 }
   0x8   :  { %352 = shalt.err (!%p349_p2)
}
   0x9   :  { %s353_s27 = scalar_lea.vmem %s29_s19, 256  ;;  %p358_p4 = scmp.lt.s32.totalorder %s29_s19, %s29_s19 }
   0xa   :  { %p354_p3 = scmp.ne.s32.totalorder %s29_s19, %s353_s27  ;;  %p359_p5 = scmp.lt.s32.totalorder %s353_s27, %s353_s27 }
   0xc   :  { %p360_p6 = por %p359_p5, %p358_p4 }
   0xe   :  { %p361_p7 = pnand %p360_p6, %p354_p3 }
  0x10   :  { %364 = shalt.err (!%p361_p7)
}
  0x11   :  { %s438_s28 = smov 128   ;;  %s439_s29 = smov 8  }
  0x12   :  { %34 = dma.hbm_to_vmem [thread:$0]  %s533_s1, 256, %s29_s19, [#allocation7], %s438_s28, %s438_s28, %s439_s29  }
  0x13   :  { %s440_s7 = smov [#allocation3]   ;;  %s441_s9 = smov [#allocation8]  }
  0x14   :  { %s19_s8 = sshll.u32 %s440_s7, 4  ;;  %s42_s10 = sshll.u32 %s441_s9, 4  ;;  %s20_s8 = int_to_ptr.vmem [resolvable:$true] %s19_s8  ;;  %s43_s10 = int_to_ptr.vmem [resolvable:$true] %s42_s10 }
  0x15   :  { %s365_s13 = scalar_lea.hbm %s532_s0, 64 }
  0x16   :  { %p366_p8 = scmp.ne.s32.totalorder %s532_s0, %s365_s13  ;;  %p369_p9 = scmp.lt.u32.totalorder %s365_s13, %s532_s0 }
  0x18   :  { %p371_p10 = pnand %p369_p9, %p366_p8 }
  0x1a   :  { %374 = shalt.err (!%p371_p10)
}
  0x1b   :  { %s375_s1 = scalar_lea.vmem %s20_s8, 64  ;;  %p380_p12 = scmp.lt.s32.totalorder %s20_s8, %s20_s8 }
  0x1c   :  { %p376_p11 = scmp.ne.s32.totalorder %s20_s8, %s375_s1  ;;  %p381_p13 = scmp.lt.s32.totalorder %s375_s1, %s375_s1 }
  0x1e   :  { %p382_p0 = por %p381_p13, %p380_p12 }
  0x20   :  { %p383_p1 = pnand %p382_p0, %p376_p11 }
  0x22   :  { %386 = shalt.err (!%p383_p1)
}
  0x23   :  { %22 = dma.hbm_to_vmem [thread:$0]  %s532_s0, 64, %s20_s8, [#allocation4]  }
  0x24   :  { %s387_s22 = scalar_lea.hbm %s535_s3, 1024 }
  0x25   :  { %p388_p2 = scmp.ne.s32.totalorder %s535_s3, %s387_s22  ;;  %p391_p3 = scmp.lt.u32.totalorder %s387_s22, %s535_s3 }
  0x27   :  { %p393_p4 = pnand %p391_p3, %p388_p2 }
  0x29   :  { %396 = shalt.err (!%p393_p4)
}
  0x2a   :  { %s397_s27 = scalar_lea.vmem %s43_s10, 1024  ;;  %p402_p6 = scmp.lt.s32.totalorder %s43_s10, %s43_s10 }
  0x2b   :  { %p398_p5 = scmp.ne.s32.totalorder %s43_s10, %s397_s27  ;;  %p403_p7 = scmp.lt.s32.totalorder %s397_s27, %s397_s27 }
  0x2d   :  { %p404_p8 = por %p403_p7, %p402_p6 }
  0x2f   :  { %p405_p9 = pnand %p404_p8, %p398_p5 }
  0x31   :  { %408 = shalt.err (!%p405_p9)
}
  0x32   :  { %s442_s0 = smov 64   ;;  %s443_s28 = smov 4  }
  0x33   :  { %48 = dma.hbm_to_vmem [thread:$0]  %s535_s3, 1024, %s43_s10, [#allocation7], %s442_s0, %s442_s0, %s443_s28  }
  0x34   :  { %431 = dma.done.wait [#allocation4], 64  }
  0x35   :  { %432 = vsyncadd [#allocation4], 4294967232 }
  0x36   :  { %433 = dma.done.wait [#allocation7], 1280  }
  0x37   :  { %434 = vsyncadd [#allocation7], 4294966016  ;;  %v444_v0 = vmov 0   ;;  %v328_v1 = vld [vmem:[#allocation6 + $0x4] ss:$8 sps:$4 sm:$0xff]   ;;  %vm90_vm0 = vcmask 130048   ;;  %v70_v13 = vlaneseq }
  0x38   :  { %126 = vmatprep.mubr.bf16.mxu0 %v444_v0  ;;  %v330_v2 = vld [vmem:[#allocation6] ss:$8 sps:$4 sm:$0xff]   ;;  %v65_v3 = vld [vmem:[#allocation3] sm:$0xf]  ;;  %94 = vmatprep.subr.bf16.mxu0 %v328_v1  ;;  %v331_v4 = vld [vmem:[#allocation8] sm:$0xff]   ;;  %v445_v5 = vmov 0.0  }
  0x39   :  { %95 = vmatpush1.bf16.msra.mxu0 %v330_v2  ;;  %297 = vmatprep.subr.bf16.mxu1 %v445_v5  ;;  %v332_v6 = vld [vmem:[#allocation8 + $0x8] sm:$0xff]   ;;  %v333_v7 = vld [vmem:[#allocation8 + $0x10] sm:$0xff]   ;;  %v334_v8 = vld [vmem:[#allocation8 + $0x18] sm:$0xff]   ;;  %vm446_vm1 = vmmov 0   ;;  %v71_v14 = vshrl.u32 %v70_v13, 7  ;;  %s447_s8 = smov [#allocation9]  }
  0x3a   :  { %298 = vmatpush3.bf16.msra.mxu1 %v331_v4  ;;  %v335_v9 = vld [vmem:[#allocation8 + $0x20] sm:$0xff]   ;;  %v336_v10 = vld [vmem:[#allocation8 + $0x28] sm:$0xff]   ;;  %v337_v11 = vld [vmem:[#allocation8 + $0x30] sm:$0xff]   ;;  %313 = vmatprep.mubr.msk.bf16.mxu1 %vm446_vm1, %v445_v5  ;;  %s265_s9 = sshll.u32 %s447_s8, 4  ;;  %s266_s9 = int_to_ptr.vmem [resolvable:$true] %s265_s9 }
  0x3b   :  { %299 = vmatprep.subr.bf16.mxu1 %v445_v5  ;;  %v338_v12 = vld [vmem:[#allocation8 + $0x38] sm:$0xff]   ;;  %v76_v15 = vsub.s32 1, %v71_v14  ;;  %v68_v16 = vld [vmem:[%s534_s2] sm:$0x3]  ;;  %v72_v26 = vsub.s32 0, %v71_v14  ;;  %s409_s10 = scalar_lea.vmem %s266_s9, 64  ;;  %p414_p11 = scmp.lt.s32.totalorder %s266_s9, %s266_s9 }
  0x3c   :  { %277 = vmatmul.mubr.msk.bf16.vlgmr.msra.gmra.mrb[0].mxu0 %vm90_vm0, %v65_v3  ;;  %v279_v33 = vld [vmem:[%s536_s4] ss:$0 sm:$0xff]  ;;  %p410_p10 = scmp.ne.s32.totalorder %s266_s9, %s409_s10  ;;  %p415_p12 = scmp.lt.s32.totalorder %s409_s10, %s409_s10 }
  0x3d   :  { %v77_v17 = vrot.slane %v68_v16, %v76_v15  ;;  %v73_v27 = vrot.slane %v68_v16, %v72_v26 }
  0x3e   :  { %300 = vmatpush3.bf16.msra.mxu1 %v332_v6  ;;  %p416_p13 = por %p415_p12, %p414_p11 }
  0x3f   :  { %301 = vmatprep.subr.bf16.mxu1 %v445_v5 }
  0x40   :  { %p417_p0 = pnand %p416_p13, %p410_p10 }
  0x42   :  { %302 = vmatpush3.bf16.msra.mxu1 %v333_v7 }
  0x43   :  { %303 = vmatprep.subr.bf16.mxu1 %v445_v5 }
  0x46   :  { %304 = vmatpush3.bf16.msra.mxu1 %v334_v8 }
  0x47   :  { %305 = vmatprep.subr.bf16.mxu1 %v445_v5 }
  0x4a   :  { %306 = vmatpush3.bf16.msra.mxu1 %v335_v9 }
  0x4b   :  { %307 = vmatprep.subr.bf16.mxu1 %v445_v5 }
  0x4e   :  { %308 = vmatpush3.bf16.msra.mxu1 %v336_v10 }
  0x4f   :  { %309 = vmatprep.subr.bf16.mxu1 %v445_v5 }
  0x52   :  { %310 = vmatpush3.bf16.msra.mxu1 %v337_v11 }
  0x53   :  { %311 = vmatprep.subr.bf16.mxu1 %v445_v5 }
  0x56   :  { %312 = vmatpush3.bf16.msra.mxu1 %v338_v12 }
 0x10f   :  { %v128_v18 = vpop.f32.mrb[0].mxu0 }
 0x110   :  { %v130_v19 = vpop.f32.mrb[1].mxu0  ;;  %v129_v28 = vadd.f32 %v128_v18, %v73_v27 }
 0x111   :  { %v131_v20 = vadd.f32 %v130_v19, %v77_v17  ;;  %v132_v21 = vpop.f32.mrb[2].mxu0 }
 0x112   :  { %v133_v22 = vpop.f32.mrb[3].mxu0 }
 0x113   :  { %v278_v23 = vmul.f32 -1.442695, %v131_v20 }
 0x115   :  { %339 = vpow2.f32 %v278_v23 }
 0x11f   :  { %v340_v24 = vpop.eup %339 }
 0x120   :  { %v138_v25 = vadd.f32 1.0, %v340_v24 }
 0x122   :  { %341 = vrcp.f32 %v138_v25 }
 0x12c   :  { %v342_v29 = vpop.eup %341 }
 0x12d   :  { %v141_v30 = vmul.f32 %v342_v29, %v129_v28 }
 0x12f   :  { %v142_v31 = vpack.c.bf16 %v141_v30, %v141_v30 }
 0x131   :  { %143 = vst [vmem:[#allocation2] sm:$0xf] %v142_v31 }
 0x138   :  { %v144_v32 = vld [vmem:[#allocation2] sm:$0xf] }
 0x139   :  { %314 = vmatmul.mubr.bf16.vlgmr.msra.gmra.mrb[0].mxu1 %v144_v32 }
 0x20c   :  { %v250_v34 = vpop.f32.mrb[0].mxu1 }
 0x20d   :  { %v251_v35 = vadd.f32 %v279_v33, %v250_v34  ;;  %v315_v36 = vpop.f32.mrb[1].mxu1 }
 0x20e   :  { %v253_v37 = vpop.f32.mrb[2].mxu1 }
 0x20f   :  { %v256_v38 = vmax.f32 %v251_v35, 0.0  ;;  %v316_v39 = vpop.f32.mrb[3].mxu1 }
 0x211   :  { %v257_v40 = vpack.c.bf16 %v256_v38, %v256_v38 }
 0x213   :  { %258 = vst [vmem:[#allocation9] sm:$0xf] %v257_v40 }
 0x214   :  { %420 = shalt.err (!%p417_p0)
}
 0x215   :  { %s421_s12 = scalar_lea.hbm %s537_s5, 64 }
 0x216   :  { %p422_p1 = scmp.ne.s32.totalorder %s537_s5, %s421_s12  ;;  %p425_p2 = scmp.lt.u32.totalorder %s421_s12, %s537_s5 }
 0x218   :  { %p427_p3 = pnand %p425_p2, %p422_p1 }
 0x21a   :  { %430 = shalt.err (!%p427_p3)
}
 0x21b   :  { %268 = dma.vmem_to_hbm [thread:$0]  %s266_s9, 64, %s537_s5, [#allocation5]  }
 0x21c   :  { %435 = dma.done.wait [#allocation5], 64  }
 0x21d   :  { %436 = vsyncadd [#allocation5], 4294967232 }
 0x21e   :  { %272 = vsyncpa [#allocation4], 1 }
 0x21f   :  { %273 = vsyncpa [#allocation7], 1 }
 0x220   :  { %274 = vsyncpa [#allocation5], 1 }

</bundles_post_ra>
